<compile_context>
chip_gen: v6e
topology: v6e:2x2x1
jax: 0.10.0
libtpu: 0.0.40
codegen_flags: <defaults>
</compile_context>

<pallas_src>
import functools

import jax
import jax.numpy as jnp
from jax.experimental import pallas as pl
from jax.experimental.pallas import tpu as pltpu


def _fine_matching_loss_kernel(
    ref_ref,      # (bb, N, 8)   augmented ref knn points
    src_ref,      # (bb, M, 8)   augmented (already transformed) src knn points
    smask_ref,    # (bb, 1, M)   src mask as float32 (lane-dense)
    s_core_ref,   # (bb, N, M)   matching_scores[:, :-1, :-1]
    s_row_ref,    # (bb, N, 1)   matching_scores[:, :-1, -1:]
    s_col_ref,    # (bb, 1, M)   matching_scores[:, -1:, :-1]
    sum_ref,      # (1, 1, 1)    partial sum of selected scores
    cnt_ref,      # (1, 1, 1)    partial count of selected entries
    *,
    r2,
):
    ref_aug = ref_ref[...]
    src_aug = src_ref[...]
    smask = smask_ref[...]
    s_core = s_core_ref[...]
    s_row = s_row_ref[...]
    s_col = s_col_ref[...]

    # Single augmented matmul: squared pairwise distance + BIG penalties for
    # masked-out ref rows / src cols, so the threshold already applies gt_masks.
    dists = jnp.einsum('bnd,bmd->bnm', ref_aug, src_aug,
                       preferred_element_type=jnp.float32)          # (bb, N, M)
    gt_f = (dists < r2).astype(jnp.float32)                         # (bb, N, M)

    rmask = ref_aug[:, :, 7:8]                                      # (bb, N, 1)

    row_sum = jnp.sum(gt_f, axis=2, keepdims=True)                  # (bb, N, 1)
    col_sum = jnp.sum(gt_f, axis=1, keepdims=True)                  # (bb, 1, M)

    # slack labels: rows/cols with no GT correspondence but valid mask
    slack_row = jnp.where(row_sum < 0.5, rmask, 0.0)                # (bb, N, 1)
    slack_col = jnp.where(col_sum < 0.5, smask, 0.0)                # (bb, 1, M)

    total = (jnp.sum(s_core * gt_f)
             + jnp.sum(s_row * slack_row)
             + jnp.sum(s_col * slack_col))
    # reuse row_sum for the core count (avoids a second full (N,M) reduction)
    count = jnp.sum(row_sum) + jnp.sum(slack_row) + jnp.sum(slack_col)

    sum_ref[...] = jnp.broadcast_to(total, (1, 1, 1))
    cnt_ref[...] = jnp.broadcast_to(count, (1, 1, 1))


def fine_matching_loss(ref_points, src_points, ref_masks, src_masks,
                       matching_scores, transform, positive_radius,
                       *, bb_max=128):
    """Pallas implementation of FineMatchingLoss.forward."""
    B, N, _ = ref_points.shape
    _, M, _ = src_points.shape
    Dp = 8
    BIG = 1.0e8  # >> positive_radius**2; pushes masked pairs out of range

    # Pick batch-block size so the double-buffered working set stays well
    # inside VMEM on every generation (v7x has 64 MiB physical).
    per_batch_bytes = 4 * (N * Dp + M * Dp + N * M + N + 2 * M)
    budget = 12 * 1024 * 1024
    bb = max(1, min(bb_max, B, budget // max(per_batch_bytes, 1)))
    nb = (B + bb - 1) // bb
    Bp = nb * bb

    R = transform[:3, :3].astype(jnp.float32)
    t = transform[:3, 3].astype(jnp.float32)

    ref_f = ref_points.astype(jnp.float32)
    src_f = src_points.astype(jnp.float32) @ R.T + t      # apply_transform (wrapper)
    rmask_f = ref_masks.astype(jnp.float32)               # (B, N)
    smask_f = src_masks.astype(jnp.float32)               # (B, M)
    scores = matching_scores.astype(jnp.float32)          # (B, N+1, M+1)

    if Bp != B:
        # Pad batch with zero masks: padded batches contribute 0 to sum & count.
        pad = Bp - B
        pad0 = lambda x: jnp.pad(x, ((0, pad),) + ((0, 0),) * (x.ndim - 1))
        ref_f, src_f = pad0(ref_f), pad0(src_f)
        rmask_f, smask_f = pad0(rmask_f), pad0(smask_f)
        scores = pad0(scores)

    ones_r = jnp.ones((Bp, N, 1), jnp.float32)
    ref_aug = jnp.concatenate([
        ref_f,                                              # 0-2: ref xyz
        jnp.sum(ref_f * ref_f, axis=-1, keepdims=True),     # 3  : ||ref||^2
        ones_r,                                             # 4  : picks up ||src'||^2
        (1.0 - rmask_f)[:, :, None] * BIG,                  # 5  : ref-mask penalty
        ones_r,                                             # 6  : picks up src-mask penalty
        rmask_f[:, :, None],                                # 7  : stashed ref mask
    ], axis=-1)                                             # (Bp, N, 8)

    ones_s = jnp.ones((Bp, M, 1), jnp.float32)
    src_aug = jnp.concatenate([
        -2.0 * src_f,                                       # 0-2: -2 * transformed src xyz
        ones_s,                                             # 3
        jnp.sum(src_f * src_f, axis=-1, keepdims=True),     # 4  : ||src'||^2
        ones_s,                                             # 5
        (1.0 - smask_f)[:, :, None] * BIG,                  # 6  : src-mask penalty
        jnp.zeros((Bp, M, 1), jnp.float32),                 # 7  : zero (ignores ref col 7)
    ], axis=-1)                                             # (Bp, M, 8)

    s_core = scores[:, :-1, :-1]                            # (Bp, N, M)
    s_row = scores[:, :-1, -1:]                             # (Bp, N, 1)
    s_col = scores[:, -1:, :-1]                             # (Bp, 1, M)
    smask_l = smask_f[:, None, :]                           # (Bp, 1, M)

    kernel = functools.partial(_fine_matching_loss_kernel,
                               r2=float(positive_radius) ** 2)

    sums, cnts = pl.pallas_call(
        kernel,
        out_shape=(jax.ShapeDtypeStruct((nb, 1, 1), jnp.float32),
                   jax.ShapeDtypeStruct((nb, 1, 1), jnp.float32)),
        grid_spec=pltpu.PrefetchScalarGridSpec(
            num_scalar_prefetch=0,
            grid=(nb,),
            in_specs=[
                pl.BlockSpec((bb, N, Dp), lambda b: (b, 0, 0)),
                pl.BlockSpec((bb, M, Dp), lambda b: (b, 0, 0)),
                pl.BlockSpec((bb, 1, M), lambda b: (b, 0, 0)),
                pl.BlockSpec((bb, N, M), lambda b: (b, 0, 0)),
                pl.BlockSpec((bb, N, 1), lambda b: (b, 0, 0)),
                pl.BlockSpec((bb, 1, M), lambda b: (b, 0, 0)),
            ],
            out_specs=[
                pl.BlockSpec((1, 1, 1), lambda b: (b, 0, 0)),
                pl.BlockSpec((1, 1, 1), lambda b: (b, 0, 0)),
            ],
        ),
        compiler_params=pltpu.CompilerParams(
            dimension_semantics=("parallel",),
            vmem_limit_bytes=32 * 1024 * 1024),
    )(ref_aug, src_aug, smask_l, s_core, s_row, s_col)

    # Note: if no labels are selected at all, count==0 -> NaN, exactly like the
    # PyTorch reference (-matching_scores[labels].mean() over an empty set).
    return -jnp.sum(sums) / jnp.sum(cnts)


def reference_loss(ref_points, src_points, ref_masks, src_masks,
                   matching_scores, transform, positive_radius):
    """Pure-JAX reference mirroring the PyTorch forward."""
    R = transform[:3, :3]
    t = transform[:3, 3]
    src_t = src_points @ R.T + t
    cross = jnp.einsum('bnd,bmd->bnm', ref_points, src_t)
    d2 = (jnp.sum(ref_points ** 2, -1)[:, :, None]
          + jnp.sum(src_t ** 2, -1)[:, None, :] - 2.0 * cross)
    gt_masks = ref_masks[:, :, None] & src_masks[:, None, :]
    gt_corr = (d2 < positive_radius ** 2) & gt_masks
    slack_row = (jnp.sum(gt_corr, axis=2) == 0) & ref_masks
    slack_col = (jnp.sum(gt_corr, axis=1) == 0) & src_masks
    labels = jnp.zeros(matching_scores.shape, bool)
    labels = labels.at[:, :-1, :-1].set(gt_corr)
    labels = labels.at[:, :-1, -1].set(slack_row)
    labels = labels.at[:, -1, :-1].set(slack_col)
    total = jnp.sum(jnp.where(labels, matching_scores, 0.0))
    count = jnp.sum(labels).astype(jnp.float32)
    return -total / count


if __name__ == "__main__":
    key = jax.random.PRNGKey(0)
    k1, k2, k3, k4, k5 = jax.random.split(key, 5)

    B, N, M = 2, 8, 8
    POSITIVE_RADIUS = 0.3  # cfg.fine_loss.positive_radius (deterministic, in-script)

    ref_points = jax.random.uniform(k1, (B, N, 3), jnp.float32)
    src_points = jax.random.uniform(k2, (B, M, 3), jnp.float32)
    ref_masks = (jax.random.uniform(k3, (B, N)) > 0.3).at[:, 0].set(True)
    src_masks = (jax.random.uniform(k4, (B, M)) > 0.3).at[:, 0].set(True)
    matching_scores = jax.random.normal(k5, (B, N + 1, M + 1), jnp.float32)

    theta = 0.2
    c, s = jnp.cos(theta), jnp.sin(theta)
    transform = jnp.eye(4, dtype=jnp.float32)
    transform = transform.at[:3, :3].set(
        jnp.array([[c, -s, 0.0], [s, c, 0.0], [0.0, 0.0, 1.0]], jnp.float32))
    transform = transform.at[:3, 3].set(jnp.array([0.1, -0.05, 0.2], jnp.float32))

    loss = fine_matching_loss(ref_points, src_points, ref_masks, src_masks,
                              matching_scores, transform, POSITIVE_RADIUS)
    loss = jax.block_until_ready(loss)

    ref = reference_loss(ref_points, src_points, ref_masks, src_masks,
                         matching_scores, transform, POSITIVE_RADIUS)
    assert jnp.isfinite(loss), f"non-finite loss: {loss}"
    assert jnp.abs(loss - ref) < 1e-4, f"mismatch: pallas={loss} ref={ref}"
    print("KERNEL_OK")
</pallas_src>

<mosaic_0001>
module attributes {stable_mosaic.version = 11 : i64} {
  func.func @_fine_matching_loss_kernel(%arg0: i32, %arg1: memref<2x8x8xf32, #tpu.memory_space<vmem>>, %arg2: memref<2x8x8xf32, #tpu.memory_space<vmem>>, %arg3: memref<2x1x8xf32, #tpu.memory_space<vmem>>, %arg4: memref<2x8x8xf32, #tpu.memory_space<vmem>>, %arg5: memref<2x8x1xf32, #tpu.memory_space<vmem>>, %arg6: memref<2x1x8xf32, #tpu.memory_space<vmem>>, %arg7: memref<1x1x1xf32, #tpu.memory_space<vmem>>, %arg8: memref<1x1x1xf32, #tpu.memory_space<vmem>>) attributes {dimension_semantics = [#tpu.dimension_semantics<parallel>], iteration_bounds = array<i64: 1>, scalar_prefetch = 0 : i64, scratch_operands = 0 : i64, tpu.core_type = #tpu.core_type<tc>, window_params = [{transform_indices = @transform_0, window_bounds = array<i64: 2, 8, 8>}, {transform_indices = @transform_1, window_bounds = array<i64: 2, 8, 8>}, {transform_indices = @transform_2, window_bounds = array<i64: 2, 1, 8>}, {transform_indices = @transform_3, window_bounds = array<i64: 2, 8, 8>}, {transform_indices = @transform_4, window_bounds = array<i64: 2, 8, 1>}, {transform_indices = @transform_5, window_bounds = array<i64: 2, 1, 8>}, {transform_indices = @transform_6, window_bounds = array<i64: 1, 1, 1>}, {transform_indices = @transform_7, window_bounds = array<i64: 1, 1, 1>}]} {
    %c0 = arith.constant 0 : index
    %c0_0 = arith.constant 0 : index
    %c0_1 = arith.constant 0 : index
    %0 = vector.load %arg1[%c0, %c0_0, %c0_1] : memref<2x8x8xf32, #tpu.memory_space<vmem>>, vector<2x8x8xf32>
    %c0_2 = arith.constant 0 : index
    %c0_3 = arith.constant 0 : index
    %c0_4 = arith.constant 0 : index
    %1 = vector.load %arg2[%c0_2, %c0_3, %c0_4] : memref<2x8x8xf32, #tpu.memory_space<vmem>>, vector<2x8x8xf32>
    %c0_5 = arith.constant 0 : index
    %c0_6 = arith.constant 0 : index
    %c0_7 = arith.constant 0 : index
    %2 = vector.load %arg3[%c0_5, %c0_6, %c0_7] : memref<2x1x8xf32, #tpu.memory_space<vmem>>, vector<2x1x8xf32>
    %c0_8 = arith.constant 0 : index
    %c0_9 = arith.constant 0 : index
    %c0_10 = arith.constant 0 : index
    %3 = vector.load %arg4[%c0_8, %c0_9, %c0_10] : memref<2x8x8xf32, #tpu.memory_space<vmem>>, vector<2x8x8xf32>
    %c0_11 = arith.constant 0 : index
    %c0_12 = arith.constant 0 : index
    %c0_13 = arith.constant 0 : index
    %4 = vector.load %arg5[%c0_11, %c0_12, %c0_13] : memref<2x8x1xf32, #tpu.memory_space<vmem>>, vector<2x8x1xf32>
    %c0_14 = arith.constant 0 : index
    %c0_15 = arith.constant 0 : index
    %c0_16 = arith.constant 0 : index
    %5 = vector.load %arg6[%c0_14, %c0_15, %c0_16] : memref<2x1x8xf32, #tpu.memory_space<vmem>>, vector<2x1x8xf32>
    "tpu.trace_start"() <{level = 10 : i32, message = "bnd,bmd->bnm"}> : () -> ()
    %cst = arith.constant dense<0.000000e+00> : vector<2x8x8xf32>
    %6 = tpu.matmul %0, %1, %cst {dimension_numbers = #tpu.dot_dimension_numbers<[2], [2], [1], [1], [0, 0, 0, 1, 1, 1], [0], [0]>} : vector<2x8x8xf32>, vector<2x8x8xf32>, vector<2x8x8xf32> -> vector<2x8x8xf32>
    %cst_17 = arith.constant 9.000000e-02 : f32
    "tpu.trace_stop"() : () -> ()
    %7 = vector.broadcast %cst_17 : f32 to vector<2x8x8xf32>
    %8 = arith.cmpf olt, %6, %7 : vector<2x8x8xf32>
    %9 = arith.extui %8 : vector<2x8x8xi1> to vector<2x8x8xi32>
    %10 = arith.sitofp %9 : vector<2x8x8xi32> to vector<2x8x8xf32>
    %11 = vector.extract_strided_slice %0 {offsets = [0, 0, 7], sizes = [2, 8, 1], strides = [1, 1, 1]} : vector<2x8x8xf32> to vector<2x8x1xf32>
    %cst_18 = arith.constant dense<0.000000e+00> : vector<2x8xf32>
    %12 = vector.multi_reduction <add>, %10, %cst_18 [2] : vector<2x8x8xf32> to vector<2x8xf32>
    %13 = vector.shape_cast %12 : vector<2x8xf32> to vector<2x8x1xf32>
    %cst_19 = arith.constant dense<0.000000e+00> : vector<2x8xf32>
    %14 = vector.multi_reduction <add>, %10, %cst_19 [1] : vector<2x8x8xf32> to vector<2x8xf32>
    %15 = vector.shape_cast %14 : vector<2x8xf32> to vector<2x1x8xf32>
    %cst_20 = arith.constant 5.000000e-01 : f32
    %16 = vector.broadcast %cst_20 : f32 to vector<2x8x1xf32>
    %17 = arith.cmpf olt, %13, %16 : vector<2x8x1xf32>
    %cst_21 = arith.constant 0.000000e+00 : f32
    %18 = vector.broadcast %cst_21 : f32 to vector<2x8x1xf32>
    %19 = arith.select %17, %11, %18 : vector<2x8x1xi1>, vector<2x8x1xf32>
    %cst_22 = arith.constant 5.000000e-01 : f32
    %20 = vector.broadcast %cst_22 : f32 to vector<2x1x8xf32>
    %21 = arith.cmpf olt, %15, %20 : vector<2x1x8xf32>
    %cst_23 = arith.constant 0.000000e+00 : f32
    %22 = vector.broadcast %cst_23 : f32 to vector<2x1x8xf32>
    %23 = arith.select %21, %2, %22 : vector<2x1x8xi1>, vector<2x1x8xf32>
    %24 = arith.mulf %3, %10 : vector<2x8x8xf32>
    %25 = vector.shape_cast %24 : vector<2x8x8xf32> to vector<1x2x8x8xf32>
    %cst_24 = arith.constant dense<0.000000e+00> : vector<1xf32>
    %26 = vector.multi_reduction <add>, %25, %cst_24 [1, 2, 3] : vector<1x2x8x8xf32> to vector<1xf32>
    %27 = vector.shape_cast %26 : vector<1xf32> to vector<1x1x1x1xf32>
    %28 = vector.extract %27[0, 0, 0, 0] : f32 from vector<1x1x1x1xf32>
    %29 = arith.mulf %4, %19 : vector<2x8x1xf32>
    %30 = vector.shape_cast %29 : vector<2x8x1xf32> to vector<1x2x8x1xf32>
    %cst_25 = arith.constant dense<0.000000e+00> : vector<1xf32>
    %31 = vector.multi_reduction <add>, %30, %cst_25 [1, 2, 3] : vector<1x2x8x1xf32> to vector<1xf32>
    %32 = vector.shape_cast %31 : vector<1xf32> to vector<1x1x1x1xf32>
    %33 = vector.extract %32[0, 0, 0, 0] : f32 from vector<1x1x1x1xf32>
    %34 = arith.addf %28, %33 : f32
    %35 = arith.mulf %5, %23 : vector<2x1x8xf32>
    %36 = vector.shape_cast %35 : vector<2x1x8xf32> to vector<1x2x1x8xf32>
    %cst_26 = arith.constant dense<0.000000e+00> : vector<1xf32>
    %37 = vector.multi_reduction <add>, %36, %cst_26 [1, 2, 3] : vector<1x2x1x8xf32> to vector<1xf32>
    %38 = vector.shape_cast %37 : vector<1xf32> to vector<1x1x1x1xf32>
    %39 = vector.extract %38[0, 0, 0, 0] : f32 from vector<1x1x1x1xf32>
    %40 = arith.addf %34, %39 : f32
    %41 = vector.shape_cast %13 : vector<2x8x1xf32> to vector<1x2x8x1xf32>
    %cst_27 = arith.constant dense<0.000000e+00> : vector<1xf32>
    %42 = vector.multi_reduction <add>, %41, %cst_27 [1, 2, 3] : vector<1x2x8x1xf32> to vector<1xf32>
    %43 = vector.shape_cast %42 : vector<1xf32> to vector<1x1x1x1xf32>
    %44 = vector.extract %43[0, 0, 0, 0] : f32 from vector<1x1x1x1xf32>
    %45 = vector.shape_cast %19 : vector<2x8x1xf32> to vector<1x2x8x1xf32>
    %cst_28 = arith.constant dense<0.000000e+00> : vector<1xf32>
    %46 = vector.multi_reduction <add>, %45, %cst_28 [1, 2, 3] : vector<1x2x8x1xf32> to vector<1xf32>
    %47 = vector.shape_cast %46 : vector<1xf32> to vector<1x1x1x1xf32>
    %48 = vector.extract %47[0, 0, 0, 0] : f32 from vector<1x1x1x1xf32>
    %49 = arith.addf %44, %48 : f32
    %50 = vector.shape_cast %23 : vector<2x1x8xf32> to vector<1x2x1x8xf32>
    %cst_29 = arith.constant dense<0.000000e+00> : vector<1xf32>
    %51 = vector.multi_reduction <add>, %50, %cst_29 [1, 2, 3] : vector<1x2x1x8xf32> to vector<1xf32>
    %52 = vector.shape_cast %51 : vector<1xf32> to vector<1x1x1x1xf32>
    %53 = vector.extract %52[0, 0, 0, 0] : f32 from vector<1x1x1x1xf32>
    %54 = arith.addf %49, %53 : f32
    %55 = vector.broadcast %40 : f32 to vector<1x1x1xf32>
    %c0_30 = arith.constant 0 : index
    %c0_31 = arith.constant 0 : index
    %c0_32 = arith.constant 0 : index
    %56 = vector.load %arg7[%c0_30, %c0_31, %c0_32] : memref<1x1x1xf32, #tpu.memory_space<vmem>>, vector<1x1x1xf32>
    tpu.vector_store %arg7[%c0_30, %c0_31, %c0_32], %55 {strides = array<i32>} : memref<1x1x1xf32, #tpu.memory_space<vmem>>, vector<1x1x1xf32>,
    %57 = vector.broadcast %54 : f32 to vector<1x1x1xf32>
    %c0_33 = arith.constant 0 : index
    %c0_34 = arith.constant 0 : index
    %c0_35 = arith.constant 0 : index
    %58 = vector.load %arg8[%c0_33, %c0_34, %c0_35] : memref<1x1x1xf32, #tpu.memory_space<vmem>>, vector<1x1x1xf32>
    tpu.vector_store %arg8[%c0_33, %c0_34, %c0_35], %57 {strides = array<i32>} : memref<1x1x1xf32, #tpu.memory_space<vmem>>, vector<1x1x1xf32>,
    return
  }
  func.func @transform_0(%arg0: i32) -> (i32, i32, i32) {
    %c0_i32 = arith.constant 0 : i32
    %c0_i32_0 = arith.constant 0 : i32
    %c0_i32_1 = arith.constant 0 : i32
    return %arg0, %c0_i32, %c0_i32_0 : i32, i32, i32
  }
  func.func @transform_1(%arg0: i32) -> (i32, i32, i32) {
    %c0_i32 = arith.constant 0 : i32
    %c0_i32_0 = arith.constant 0 : i32
    %c0_i32_1 = arith.constant 0 : i32
    return %arg0, %c0_i32, %c0_i32_0 : i32, i32, i32
  }
  func.func @transform_2(%arg0: i32) -> (i32, i32, i32) {
    %c0_i32 = arith.constant 0 : i32
    %c0_i32_0 = arith.constant 0 : i32
    %c0_i32_1 = arith.constant 0 : i32
    return %arg0, %c0_i32, %c0_i32_0 : i32, i32, i32
  }
  func.func @transform_3(%arg0: i32) -> (i32, i32, i32) {
    %c0_i32 = arith.constant 0 : i32
    %c0_i32_0 = arith.constant 0 : i32
    %c0_i32_1 = arith.constant 0 : i32
    return %arg0, %c0_i32, %c0_i32_0 : i32, i32, i32
  }
  func.func @transform_4(%arg0: i32) -> (i32, i32, i32) {
    %c0_i32 = arith.constant 0 : i32
    %c0_i32_0 = arith.constant 0 : i32
    %c0_i32_1 = arith.constant 0 : i32
    return %arg0, %c0_i32, %c0_i32_0 : i32, i32, i32
  }
  func.func @transform_5(%arg0: i32) -> (i32, i32, i32) {
    %c0_i32 = arith.constant 0 : i32
    %c0_i32_0 = arith.constant 0 : i32
    %c0_i32_1 = arith.constant 0 : i32
    return %arg0, %c0_i32, %c0_i32_0 : i32, i32, i32
  }
  func.func @transform_6(%arg0: i32) -> (i32, i32, i32) {
    %c0_i32 = arith.constant 0 : i32
    %c0_i32_0 = arith.constant 0 : i32
    %c0_i32_1 = arith.constant 0 : i32
    return %arg0, %c0_i32, %c0_i32_0 : i32, i32, i32
  }
  func.func @transform_7(%arg0: i32) -> (i32, i32, i32) {
    %c0_i32 = arith.constant 0 : i32
    %c0_i32_0 = arith.constant 0 : i32
    %c0_i32_1 = arith.constant 0 : i32
    return %arg0, %c0_i32, %c0_i32_0 : i32, i32, i32
  }
}

</mosaic_0001>

<bundles_post_ra>
// kernel: tpu_custom_call.1
= control target key start
LH: loop header
LB: loop body
LE: loop exit
PB: predicated region body
PF: predicated region fallthrough
CT: control target
= control target key end

     0   :  { %13 = vsyncpa [#allocation3], 0  ;;  %s613_s0 = inlined_call_operand.vmem [shape: f32[2,8,8], index: 0, kind: input, shape index: {}]   ;;  %s614_s1 = inlined_call_operand.hbm [shape: f32[2,8,8], index: 1, kind: input, shape index: {}]   ;;  %s615_s2 = inlined_call_operand.vmem [shape: f32[2,1,8], index: 2, kind: input, shape index: {}]   ;;  %s616_s3 = inlined_call_operand.hbm [shape: f32[2,8,8], index: 3, kind: input, shape index: {}]   ;;  %s617_s4 = inlined_call_operand.vmem [shape: f32[2,8,1], index: 4, kind: input, shape index: {}]   ;;  %s618_s5 = inlined_call_operand.vmem [shape: f32[2,1,8], index: 5, kind: input, shape index: {}]   ;;  %s619_s6 = inlined_call_operand.hbm [shape: f32[1,1,1], index: 6, kind: output, shape index: {0}]   ;;  %s620_s7 = inlined_call_operand.hbm [shape: f32[1,1,1], index: 7, kind: output, shape index: {1}]  }
   0x1   :  { %14 = vsyncpa [#allocation6], 0 }
   0x2   :  { %15 = vsyncpa [#allocation4], 0 }
   0x3   :  { %16 = vsyncpa [#allocation9], 0  ;;  %s508_s24 = smov [#allocation2]  }
   0x4   :  { %s24_s25 = sshll.u32 %s508_s24, 4  ;;  %s25_s25 = int_to_ptr.vmem [resolvable:$true] %s24_s25 }
   0x5   :  { %s428_s26 = scalar_lea.vmem %s25_s25, 256  ;;  %p433_p1 = scmp.lt.s32.totalorder %s25_s25, %s25_s25 }
   0x6   :  { %p429_p0 = scmp.ne.s32.totalorder %s25_s25, %s428_s26  ;;  %p434_p2 = scmp.lt.s32.totalorder %s428_s26, %s428_s26 }
   0x8   :  { %p435_p3 = por %p434_p2, %p433_p1 }
   0xa   :  { %p436_p4 = pnand %p435_p3, %p429_p0 }
   0xc   :  { %439 = shalt.err (!%p436_p4)
}
   0xd   :  { %s509_s27 = smov 128   ;;  %s510_s28 = smov 8  }
   0xe   :  { %30 = dma.hbm_to_vmem [thread:$0]  %s614_s1, 256, %s25_s25, [#allocation3], %s509_s27, %s509_s27, %s510_s28  }
   0xf   :  { %s511_s8 = smov [#allocation5]  }
  0x10   :  { %s38_s9 = sshll.u32 %s511_s8, 4  ;;  %s39_s9 = int_to_ptr.vmem [resolvable:$true] %s38_s9 }
  0x11   :  { %s448_s10 = scalar_lea.vmem %s39_s9, 256  ;;  %p453_p6 = scmp.lt.s32.totalorder %s39_s9, %s39_s9 }
  0x12   :  { %p449_p5 = scmp.ne.s32.totalorder %s39_s9, %s448_s10  ;;  %p454_p7 = scmp.lt.s32.totalorder %s448_s10, %s448_s10 }
  0x14   :  { %p455_p8 = por %p454_p7, %p453_p6 }
  0x16   :  { %p456_p9 = pnand %p455_p8, %p449_p5 }
  0x18   :  { %459 = shalt.err (!%p456_p9)
}
  0x19   :  { %44 = dma.hbm_to_vmem [thread:$0]  %s616_s3, 256, %s39_s9, [#allocation6], %s509_s27, %s509_s27, %s510_s28  }
  0x1a   :  { %500 = dma.done.wait [#allocation3], 256  }
  0x1b   :  { %501 = vsyncadd [#allocation3], 4294967040 }
  0x1c   :  { %502 = dma.done.wait [#allocation6], 256  }
  0x1d   :  { %503 = vsyncadd [#allocation6], 4294967040  ;;  %v512_v0 = vmov 0.0   ;;  %vm513_vm0 = vmmov 0   ;;  %vm67_vm1 = vcmask 64512   ;;  %v57_v1 = vld [vmem:[#allocation2] sm:$0xff] }
  0x1e   :  { %389 = vmatprep.subr.mxu0 %v512_v0  ;;  %394 = vmatprep.subr.mxu1 %v512_v0  ;;  %v58_v2 = vld [vmem:[#allocation2 + $0x8] sm:$0xff]  ;;  %v55_v3 = vld [vmem:[%s613_s0] sm:$0xff]  ;;  %v61_v5 = vld [vmem:[#allocation5] sm:$0xff]  ;;  %vm292_vm4 = vcmask 57344   ;;  %vm276_vm8 = vcmask 7168   ;;  %s515_s25 = smov [#allocation7]  }
  0x1f   :  { %391 = vmatprep.mubr.msk.f32.mxu0 %vm513_vm0, %v512_v0  ;;  %396 = vmatprep.mubr.msk.f32.mxu1 %vm513_vm0, %v512_v0  ;;  %v571_v4 = vld [vmem:[%s613_s0 + $0x8] sm:$0xff]  ;;  %v62_v7 = vld [vmem:[#allocation5 + $0x8] sm:$0xff]  ;;  %v59_v30 = vld [vmem:[%s615_s2] sm:$0x1]  ;;  %s355_s26 = sshll.u32 %s515_s25, 4  ;;  %s516_s28 = smov [#allocation8]   ;;  %s356_s26 = int_to_ptr.vmem [resolvable:$true] %s355_s26 }
  0x20   :  { %390 = vmatpush3.xpose.msk.msra.mxu0 %vm67_vm1, %v57_v1  ;;  %395 = vmatpush3.xpose.msk.msra.mxu1 %vm67_vm1, %v58_v2  ;;  %v60_v31 = vld [vmem:[%s615_s2 + $0x1] sm:$0x1]  ;;  %v65_v34 = vld [vmem:[%s618_s5] sm:$0x1]  ;;  %s514_s2 = smov 121   ;;  %v64_v62 = vld [vmem:[%s617_s4 + $0x8] sm:$0xff]  ;;  %p465_p11 = scmp.lt.s32.totalorder %s356_s26, %s356_s26 }
  0x21   :  { %v66_v35 = vld [vmem:[%s618_s5 + $0x1] sm:$0x1]  ;;  %s365_s29 = sshll.u32 %s516_s28, 4  ;;  %vm345_vm10 = vcmask 0   ;;  %s460_s3 = scalar_lea.vmem %s356_s26, 16  ;;  %s366_s29 = int_to_ptr.vmem [resolvable:$true] %s365_s29 }
  0x22   :  { %v63_v60 = vld [vmem:[%s617_s4] sm:$0xff]  ;;  %p461_p10 = scmp.ne.s32.totalorder %s356_s26, %s460_s3  ;;  %s464_s14 = scalar_lea.vmem %s356_s26, 32 }
  0x23   :  { %392 = vmatmul.mubr.msk.f32.vlgmr.msra.gmra.mxu0 %vm67_vm1, %v55_v3  ;;  %397 = vmatmul.mubr.msk.f32.vlgmr.msra.gmra.mxu1 %vm67_vm1, %v571_v4  ;;  %p466_p12 = scmp.lt.s32.totalorder %s464_s14, %s460_s3 }
  0x25   :  { %p467_p13 = por %p466_p12, %p465_p11 }
  0x27   :  { %p468_p0 = pnand %p467_p13, %p461_p10 }
  0xe3   :  { %v140_v6 = vpop.f32.mrf.mxu0  ;;  %v216_v8 = vpop.f32.mrf.mxu1 }
  0xe4   :  { %vm220_vm2 = vcmp.lt.f32.partialorder %v140_v6, 0.09  ;;  %vm221_vm3 = vcmp.lt.f32.partialorder %v216_v8, 0.09 }
  0xe5   :  { %v383_v9 = vsel %vm220_vm2, 1.0, %v512_v0  ;;  %v384_v10 = vsel %vm221_vm3, 1.0, %v512_v0  ;;  %v393_v11 = vpop.f32.mrf.mxu0  ;;  %v398_v12 = vpop.f32.mrf.mxu1 }
  0xe6   :  { %v252_v13 = vmul.f32 %v383_v9, %v61_v5  ;;  %v253_v14 = vmul.f32 %v384_v10, %v62_v7  ;;  %v226_v15 = vsel %vm67_vm1, %v383_v9, 0.0  ;;  %v229_v16 = vsel %vm67_vm1, %v384_v10, 0.0 }
  0xe7   :  { %227 = vadd.xlane.f32.xlu0 %v226_v15  ;;  %v232_v17 = vrot.slane %v226_v15, 4  ;;  %v238_v18 = vrot.slane %v229_v16, 4 }
  0xe8   :  { %v254_v21 = vsel %vm67_vm1, %v252_v13, 0.0  ;;  %v255_v22 = vsel %vm67_vm1, %v253_v14, 0.0 }
  0xe9   :  { %v233_v19 = vadd.f32 %v232_v17, %v226_v15  ;;  %v239_v20 = vadd.f32 %v238_v18, %v229_v16  ;;  %v256_v27 = vadd.f32 %v255_v22, %v254_v21 }
  0xeb   :  { %v234_v23 = vrot.slane %v233_v19, 2  ;;  %v240_v24 = vrot.slane %v239_v20, 2  ;;  %230 = vadd.xlane.f32.xlu0 %v229_v16 }
  0xed   :  { %v235_v25 = vadd.f32 %v234_v23, %v233_v19  ;;  %v241_v26 = vadd.f32 %v240_v24, %v239_v20 }
  0xef   :  { %v236_v28 = vrot.slane %v235_v25, 1  ;;  %v242_v29 = vrot.slane %v241_v26, 1  ;;  %257 = vadd.xlane.f32.xlu0 %v256_v27 }
  0xf1   :  { %v237_v32 = vadd.f32 %v236_v28, %v235_v25  ;;  %v243_v33 = vadd.f32 %v242_v29, %v241_v26 }
  0xf3   :  { %vm248_vm5 = vcmp.lt.f32.partialorder %v237_v32, 0.5  ;;  %vm249_vm6 = vcmp.lt.f32.partialorder %v243_v33, 0.5 }
  0xf4   :  { %v250_v36 = vsel %vm248_vm5, %v59_v30, 0.0  ;;  %v251_v37 = vsel %vm249_vm6, %v60_v31, 0.0 }
  0xf5   :  { %v290_v38 = vmul.f32 %v250_v36, %v65_v34  ;;  %v291_v39 = vmul.f32 %v251_v37, %v66_v35  ;;  %v331_v40 = vsel %vm292_vm4, %v250_v36, 0.0  ;;  %v332_v41 = vsel %vm292_vm4, %v251_v37, 0.0 }
  0xf6   :  { %v333_v42 = vadd.f32 %v332_v41, %v331_v40 }
  0xf7   :  { %v293_v43 = vsel %vm292_vm4, %v290_v38, 0.0  ;;  %v294_v44 = vsel %vm292_vm4, %v291_v39, 0.0 }
  0xf8   :  { %v295_v45 = vadd.f32 %v294_v44, %v293_v43 }
  0xfa   :  { %296 = vadd.xlane.f32.xlu0 %v295_v45 }
 0x170   :  { %v228_v46 = vpop.xlane.xlu0 %227 }
 0x171   :  { %vm244_vm7 = vcmp.lt.f32.partialorder %v228_v46, 0.5  ;;  %v306_v49 = vsel %vm276_vm8, %v228_v46, 0.0 }
 0x172   :  { %v246_v47 = vsel %vm244_vm7, %v55_v3, 0.0 }
 0x173   :  { %268 = vrot.lane.b32.xlu1 %v246_v47, %s514_s2 }
 0x174   :  { %v231_v48 = vpop.xlane.xlu0 %230 }
 0x175   :  { %vm245_vm9 = vcmp.lt.f32.partialorder %v231_v48, 0.5  ;;  %v307_v50 = vsel %vm276_vm8, %v231_v48, 0.0 }
 0x176   :  { %v247_v51 = vsel %vm245_vm9, %v571_v4, 0.0  ;;  %v308_v52 = vadd.f32 %v307_v50, %v306_v49 }
 0x177   :  { %270 = vrot.lane.b32.xlu1 %v247_v51, %s514_s2 }
 0x178   :  { %v258_v53 = vpop.xlane.xlu0 %257  ;;  %309 = vadd.xlane.f32.xlu0 %v308_v52 }
 0x179   :  { %v259_v54 = vrot.slane %v258_v53, 4 }
 0x17b   :  { %v260_v55 = vadd.f32 %v259_v54, %v258_v53 }
 0x17d   :  { %v261_v56 = vrot.slane %v260_v55, 2 }
 0x17f   :  { %v262_v57 = vadd.f32 %v261_v56, %v260_v55 }
 0x181   :  { %v263_v58 = vrot.slane %v262_v57, 1 }
 0x183   :  { %v264_v59 = vadd.f32 %v263_v58, %v262_v57  ;;  %v297_v8 = vpop.xlane.xlu0 %296 }
 0x184   :  { %v298_v10 = vrot.slane %v297_v8, 4 }
 0x185   :  { %399 = vpush %v264_v59 }
 0x186   :  { %v299_v12 = vadd.f32 %v298_v10, %v297_v8 }
 0x188   :  { %v300_v16 = vrot.slane %v299_v12, 2 }
 0x18a   :  { %v301_v25 = vadd.f32 %v300_v16, %v299_v12 }
 0x18c   :  { %v302_v32 = vrot.slane %v301_v25, 1 }
 0x18e   :  { %v303_v39 = vadd.f32 %v302_v32, %v301_v25 }
 0x1b6   :  { %s400_s4 = spop %399 }
 0x1e5   :  { %v269_v61 = vpop.permute.xlu1 %268 }
 0x1e6   :  { %v274_v63 = vmul.f32 %v269_v61, %v63_v60  ;;  %v318_v1 = vsel %vm276_vm8, %v269_v61, 0.0 }
 0x1e8   :  { %v277_v5 = vsel %vm276_vm8, %v274_v63, 0.0 }
 0x1e9   :  { %v271_v0 = vpop.permute.xlu1 %270 }
 0x1ea   :  { %v275_v2 = vmul.f32 %v271_v0, %v64_v62  ;;  %v319_v3 = vsel %vm276_vm8, %v271_v0, 0.0 }
 0x1eb   :  { %v320_v4 = vadd.f32 %v319_v3, %v318_v1 }
 0x1ec   :  { %v278_v6 = vsel %vm276_vm8, %v275_v2, 0.0 }
 0x1ed   :  { %321 = vadd.xlane.f32.xlu0 %v320_v4  ;;  %v279_v7 = vadd.f32 %v278_v6, %v277_v5 }
 0x1ef   :  { %280 = vadd.xlane.f32.xlu1 %v279_v7 }
 0x1f1   :  { %334 = vadd.xlane.f32.xlu0 %v333_v42 }
 0x201   :  { %v310_v9 = vpop.xlane.xlu0 %309 }
 0x202   :  { %v311_v11 = vrot.slane %v310_v9, 4 }
 0x204   :  { %v312_v13 = vadd.f32 %v311_v11, %v310_v9 }
 0x206   :  { %v313_v18 = vrot.slane %v312_v13, 2 }
 0x208   :  { %v314_v28 = vadd.f32 %v313_v18, %v312_v13 }
 0x20a   :  { %v315_v35 = vrot.slane %v314_v28, 1 }
 0x20c   :  { %v316_v40 = vadd.f32 %v315_v35, %v314_v28 }
 0x276   :  { %v322_v14 = vpop.xlane.xlu0 %321 }
 0x277   :  { %v323_v15 = vrot.slane %v322_v14, 4 }
 0x278   :  { %v281_v17 = vpop.xlane.xlu1 %280 }
 0x279   :  { %v324_v19 = vadd.f32 %v323_v15, %v322_v14  ;;  %v282_v20 = vrot.slane %v281_v17, 4 }
 0x27a   :  { %v335_v21 = vpop.xlane.xlu0 %334 }
 0x27b   :  { %v325_v22 = vrot.slane %v324_v19, 2  ;;  %v283_v23 = vadd.f32 %v282_v20, %v281_v17  ;;  %v336_v24 = vrot.slane %v335_v21, 4 }
 0x27d   :  { %v284_v26 = vrot.slane %v283_v23, 2  ;;  %v337_v27 = vadd.f32 %v336_v24, %v335_v21  ;;  %v326_v29 = vadd.f32 %v325_v22, %v324_v19 }
 0x27f   :  { %v285_v30 = vadd.f32 %v284_v26, %v283_v23  ;;  %v338_v31 = vrot.slane %v337_v27, 2  ;;  %v327_v36 = vrot.slane %v326_v29, 1 }
 0x281   :  { %v339_v33 = vadd.f32 %v338_v31, %v337_v27  ;;  %v286_v34 = vrot.slane %v285_v30, 1  ;;  %v328_v42 = vadd.f32 %v327_v36, %v326_v29 }
 0x283   :  { %v287_v37 = vadd.f32 %v286_v34, %v285_v30  ;;  %v340_v38 = vrot.slane %v339_v33, 1 }
 0x285   :  { %401 = vpush %v287_v37  ;;  %v341_v41 = vadd.f32 %v340_v38, %v339_v33 }
 0x286   :  { %403 = vpush %v303_v39 }
 0x287   :  { %405 = vpush %v316_v40 }
 0x288   :  { %407 = vpush %v328_v42 }
 0x289   :  { %409 = vpush %v341_v41 }
 0x2b6   :  { %s402_s27 = spop %401 }
 0x2b7   :  { %s289_s30 = sadd.f32 %s402_s27, %s400_s4  ;;  %s404_s8 = spop %403 }
 0x2b8   :  { %s406_s9 = spop %405 }
 0x2b9   :  { %s305_s10 = sadd.f32 %s404_s8, %s289_s30  ;;  %s408_s11 = spop %407 }
 0x2ba   :  { %s330_s12 = sadd.f32 %s408_s11, %s406_s9  ;;  %s410_s1 = spop %409 }
 0x2bb   :  { %v344_v43 = vstv %s305_s10 }
 0x2bc   :  { %s343_s13 = sadd.f32 %s410_s1, %s330_s12  ;;  %346 = vst.msk [vmem:[#allocation7] sm:$0x1] %vm345_vm10, %v344_v43 }
 0x2bd   :  { %471 = shalt.err (!%p468_p0)
}
 0x2be   :  { %358 = dma.vmem_to_hbm [thread:$0]  %s356_s26, 16, %s619_s6, [#allocation4]   ;;  %v347_v44 = vstv %s343_s13 }
 0x2bf   :  { %348 = vst.msk [vmem:[#allocation8] sm:$0x1] %vm345_vm10, %v347_v44  ;;  %s480_s16 = scalar_lea.vmem %s366_s29, 16  ;;  %s484_s17 = scalar_lea.vmem %s366_s29, 32 }
 0x2c0   :  { %p481_p1 = scmp.ne.s32.totalorder %s366_s29, %s480_s16  ;;  %p485_p2 = scmp.lt.s32.totalorder %s366_s29, %s366_s29 }
 0x2c1   :  { %p486_p3 = scmp.lt.s32.totalorder %s484_s17, %s480_s16 }
 0x2c3   :  { %p487_p4 = por %p486_p3, %p485_p2 }
 0x2c5   :  { %p488_p5 = pnand %p487_p4, %p481_p1 }
 0x2c7   :  { %491 = shalt.err (!%p488_p5)
}
 0x2c8   :  { %368 = dma.vmem_to_hbm [thread:$0]  %s366_s29, 16, %s620_s7, [#allocation9]  }
 0x2c9   :  { %504 = dma.done.wait [#allocation4], 16  }
 0x2ca   :  { %505 = vsyncadd [#allocation4], 4294967280 }
 0x2cb   :  { %506 = dma.done.wait [#allocation9], 16  }
 0x2cc   :  { %507 = vsyncadd [#allocation9], 4294967280 }
 0x2cd   :  { %375 = vsyncpa [#allocation3], 1 }
 0x2ce   :  { %376 = vsyncpa [#allocation6], 1 }
 0x2cf   :  { %377 = vsyncpa [#allocation4], 1 }
 0x2d0   :  { %378 = vsyncpa [#allocation9], 1 }

</bundles_post_ra>
